<compile_context>
chip_gen: v7x
topology: tpu7x:2x2x1
jax: 0.10.0
libtpu: 0.0.40
codegen_flags: <defaults>
</compile_context>

<pallas_src>
import jax
import jax.numpy as jnp
from jax.experimental import pallas as pl
from jax.experimental.pallas import tpu as pltpu


def _round_up(x, m):
    return ((x + m - 1) // m) * m


def _pick_tile(total, want, unit):
    """Largest multiple of `unit` <= want that divides `total` (total % unit == 0)."""
    t = min(want, total)
    t -= t % unit
    t = max(t, unit)
    while total % t:
        t -= unit
    return t


def _vmem_capacity_bytes():
    """Physical VMEM per TensorCore (128 MiB v5e/v6e, 64 MiB v7x)."""
    try:
        return int(pltpu.get_tpu_info().vmem_capacity_bytes)
    except Exception:
        return 64 * 1024 * 1024  # conservative (v7x-sized) fallback


def _lora_linear_kernel(x_ref, wt_ref, b_ref, a_ref, bs_ref, out_ref,
                        acc_ref, xa_ref):
    """One (i, j, k) grid step.

    x tile:  (tm, tk)            wt tile: (tk, tn)   -- W^T
    b tile:  (1, tn)  f32        A tile:  (tk, r)
    bs tile: (r, tn)  = alpha*B  out:     (tm, tn)
    acc:     (tm, tn) f32 VMEM   xa:      (tm, r) f32 VMEM (cached x @ A per M tile)
    """
    j = pl.program_id(1)          # N tile index (sequential per core)
    kk = pl.program_id(2)         # K tile index (innermost, sequential)
    nk = pl.num_programs(2)

    @pl.when(kk == 0)
    def _():
        acc_ref[...] = jnp.zeros_like(acc_ref)

    # Cast activations to the matmul operand dtype inside the kernel (no extra
    # standalone HBM cast pass; no-op if the caller already feeds bf16).
    x = x_ref[...].astype(wt_ref.dtype)

    # Base linear path on the MXU, f32 accumulation across K tiles.
    acc_ref[...] += jnp.dot(x, wt_ref[...], preferred_element_type=jnp.float32)

    # LoRA down-projection x @ A: compute only for the first N tile of each M
    # tile (the N axis is "arbitrary" / sequential), accumulate across K tiles,
    # cache in VMEM, and reuse for every subsequent N tile.
    @pl.when((j == 0) & (kk == 0))
    def _():
        xa_ref[...] = jnp.zeros_like(xa_ref)

    @pl.when(j == 0)
    def _():
        xa_ref[...] += jnp.dot(x, a_ref[...], preferred_element_type=jnp.float32)

    # Finalize: LoRA up-projection + bias epilogue in f32, single cast on store.
    @pl.when(kk == nk - 1)
    def _():
        lora = jnp.dot(xa_ref[...].astype(bs_ref.dtype), bs_ref[...],
                       preferred_element_type=jnp.float32)
        out_ref[...] = (acc_ref[...] + lora + b_ref[...]).astype(out_ref.dtype)


def prepare_lora_linear_params(W, bias, A, B, alpha, *,
                               compute_dtype=jnp.bfloat16, max_tk=512):
    """One-time (load-time) parameter prep.

    - Transposes W -> W^T (in_features, out_features) so both matmuls are plain
      row-major MXU dots (no per-call W.T round-trip through HBM).
    - Folds alpha into B (B_scaled = alpha * B).
    - Zero-pads out_features to a multiple of 256 (128 if <= 128) so output
      stores are lane-dense and the N tile never degrades below the MXU width.
    - Zero-pads in_features to a multiple of the K tile when K tiling kicks in
      (in_features > max_tk); zero rows/columns contribute nothing.
    - Casts matmul operands to compute_dtype (bf16 default: 2-4x MXU rate and
      half the HBM / VMEM traffic); bias stays f32 for the epilogue.
    """
    out_features, in_features = W.shape
    r = A.shape[1]
    assert A.shape == (in_features, r) and B.shape == (r, out_features)
    assert bias.shape == (out_features,)

    n_unit = 256 if out_features > 128 else 128
    n_pad = _round_up(out_features, n_unit)

    if in_features <= max_tk:
        tk, k_pad = in_features, in_features            # K kept whole
    else:
        tk = _round_up(max_tk, 128)                     # x tile last dim: 128-aligned
        k_pad = _round_up(in_features, tk)

    w_t = jnp.swapaxes(W, 0, 1)                         # (K, N), once at load time
    b_scaled = jnp.asarray(alpha, B.dtype) * B          # fold alpha into tiny (r, N)

    w_t = jnp.pad(w_t, ((0, k_pad - in_features), (0, n_pad - out_features)))
    a_mat = jnp.pad(A, ((0, k_pad - in_features), (0, 0)))
    b_scaled = jnp.pad(b_scaled, ((0, 0), (0, n_pad - out_features)))
    bias2d = jnp.pad(bias, (0, n_pad - out_features)).reshape(1, n_pad)
    bias2d = bias2d.astype(jnp.float32)

    if compute_dtype is not None:
        w_t = w_t.astype(compute_dtype)
        a_mat = a_mat.astype(compute_dtype)
        b_scaled = b_scaled.astype(compute_dtype)

    return {"w_t": w_t, "bias2d": bias2d, "A": a_mat, "b_scaled": b_scaled,
            "tk": tk, "in_features": in_features, "out_features": out_features}


def linear_with_lora(x, params, *, tile_m=None, tile_n=256, out_dtype=None,
                     allow_resident_n=True):
    """x: (..., in_features). Returns (..., out_features)."""
    w_t = params["w_t"]
    bias2d = params["bias2d"]
    a_mat = params["A"]
    b_scaled = params["b_scaled"]
    tk = params["tk"]
    in_features = params["in_features"]
    out_features = params["out_features"]

    k_pad, n_pad = w_t.shape
    r = a_mat.shape[1]
    assert x.shape[-1] == in_features
    lead = x.shape[:-1]
    out_dtype = out_dtype or x.dtype
    cbytes = jnp.dtype(w_t.dtype).itemsize

    # Per-generation sizing: v7x has 64 MiB physical VMEM, v5e/v6e have 128 MiB.
    vmem_cap = _vmem_capacity_bytes()
    vmem_limit = min(100 * 1024 * 1024, (vmem_cap * 7) // 10)
    if tile_m is None:
        tile_m = 512 if vmem_cap >= 96 * 1024 * 1024 else 256

    x2d = x.reshape(-1, in_features)
    m = x2d.shape[0]

    # M tiling: clamp tile to the (8-aligned) problem size, pad rows with zeros.
    tm = min(tile_m, _round_up(m, 8))
    tm = max(8, tm - tm % 8)
    m_pad = _round_up(m, tm)

    # N tiling: keep the whole (padded) N resident when K*N fits a VMEM budget.
    # Then W^T / bias / alpha*B are DMA'd once for the whole M loop (grid_n == 1)
    # and the xa cache is trivially reused.
    resident_budget = min(16 * 1024 * 1024, vmem_limit // 4)
    if (allow_resident_n and n_pad <= 4096
            and k_pad * n_pad * cbytes <= resident_budget):
        tn = n_pad
    else:
        tn = _pick_tile(n_pad, tile_n, 128)

    # Pad activations (rows to a tm multiple, K columns to k_pad); zeros are inert.
    if (m_pad != m) or (k_pad != in_features):
        x2d = jnp.pad(x2d, ((0, m_pad - m), (0, k_pad - in_features)))
    # TODO(synk): keep activations in bf16 upstream so x tiles DMA at half width;
    # the operand cast itself happens inside the kernel (no standalone HBM pass).

    grid = (m_pad // tm, n_pad // tn, k_pad // tk)

    out = pl.pallas_call(
        _lora_linear_kernel,
        out_shape=jax.ShapeDtypeStruct((m_pad, n_pad), out_dtype),
        grid_spec=pltpu.PrefetchScalarGridSpec(
            num_scalar_prefetch=0,
            grid=grid,
            in_specs=[
                pl.BlockSpec((tm, tk), lambda i, j, k: (i, k)),   # x tile
                pl.BlockSpec((tk, tn), lambda i, j, k: (k, j)),   # W^T tile
                pl.BlockSpec((1, tn), lambda i, j, k: (0, j)),    # bias tile (f32)
                pl.BlockSpec((tk, r), lambda i, j, k: (k, 0)),    # A tile (small)
                pl.BlockSpec((r, tn), lambda i, j, k: (0, j)),    # alpha*B tile
            ],
            out_specs=pl.BlockSpec((tm, tn), lambda i, j, k: (i, j)),
            scratch_shapes=[
                pltpu.VMEM((tm, tn), jnp.float32),   # f32 accumulator across K
                pltpu.VMEM((tm, r), jnp.float32),    # cached x @ A per M tile
            ],
        ),
        compiler_params=pltpu.CompilerParams(
            # N and K must be sequential so the xa / acc scratches are reused
            # correctly; M stays parallel for megacore sharding (v7x).
            dimension_semantics=("parallel", "arbitrary", "arbitrary"),
            vmem_limit_bytes=int(vmem_limit),
        ),
    )(x2d, w_t, bias2d, a_mat, b_scaled)

    out = out[:m, :out_features]
    return out.reshape(*lead, out_features)


if __name__ == "__main__":
    key = jax.random.PRNGKey(0)
    k_x, k_w, k_b, k_a, k_bb = jax.random.split(key, 5)

    # Small shapes consistent with a Linear layer applied over (batch, seq, hidden).
    batch, seq = 2, 8
    in_features, out_features, r = 32, 32, 8
    alpha = 4.0

    x = jax.random.normal(k_x, (batch, seq, in_features), dtype=jnp.float32)
    W = jax.random.normal(k_w, (out_features, in_features), dtype=jnp.float32) * 0.05
    bias = jax.random.normal(k_b, (out_features,), dtype=jnp.float32) * 0.05
    # LoRALayer init: A ~ N(0,1)/sqrt(r), B = zeros.  Also test a non-zero B so
    # the LoRA path (and the alpha folding) is exercised numerically.
    A = jax.random.normal(k_a, (in_features, r), dtype=jnp.float32) / jnp.sqrt(
        jnp.float32(r))
    B_init = jnp.zeros((r, out_features), dtype=jnp.float32)
    B_trained = jax.random.normal(k_bb, (r, out_features), dtype=jnp.float32) * 0.05

    ok = True

    # 1) f32 operand path (tight tolerance), both LoRA-init (B=0) and trained B.
    for B in (B_init, B_trained):
        params = prepare_lora_linear_params(W, bias, A, B, alpha,
                                            compute_dtype=None)
        out = jax.block_until_ready(linear_with_lora(x, params))
        ref = x @ W.T + bias + alpha * ((x @ A) @ B)
        ok &= out.shape == (batch, seq, out_features)
        ok &= bool(jnp.allclose(out, ref, atol=1e-5, rtol=1e-5))

    # 2) Default bf16 operand path (f32 accumulation): looser tolerance expected.
    params_bf16 = prepare_lora_linear_params(W, bias, A, B_trained, alpha)
    out = jax.block_until_ready(linear_with_lora(x, params_bf16))
    ref = x @ W.T + bias + alpha * ((x @ A) @ B_trained)
    ok &= out.shape == (batch, seq, out_features)
    ok &= bool(jnp.allclose(out, ref, atol=2e-2, rtol=5e-2))

    # 3) Exercise the K-tiled / multi-N-tile grid path (xa cache reused across
    #    N tiles, accumulator across K tiles), still at small shapes.
    in2, out2 = 256, 192   # n_pad -> 256; max_tk=128 -> 2 K tiles
    kx2, kw2, kb2, ka2, kbb2 = jax.random.split(jax.random.PRNGKey(1), 5)
    x2 = jax.random.normal(kx2, (batch, seq, in2), dtype=jnp.float32)
    W2 = jax.random.normal(kw2, (out2, in2), dtype=jnp.float32) * 0.05
    b2 = jax.random.normal(kb2, (out2,), dtype=jnp.float32) * 0.05
    A2 = jax.random.normal(ka2, (in2, r), dtype=jnp.float32) / jnp.sqrt(
        jnp.float32(r))
    B2 = jax.random.normal(kbb2, (r, out2), dtype=jnp.float32) * 0.05
    params2 = prepare_lora_linear_params(W2, b2, A2, B2, alpha,
                                         compute_dtype=None, max_tk=128)
    out = jax.block_until_ready(
        linear_with_lora(x2, params2, tile_n=128, allow_resident_n=False))
    ref = x2 @ W2.T + b2 + alpha * ((x2 @ A2) @ B2)
    ok &= out.shape == (batch, seq, out2)
    ok &= bool(jnp.allclose(out, ref, atol=1e-3, rtol=1e-3))

    assert ok, "mismatch vs reference"
    print("KERNEL_OK")
</pallas_src>

<mosaic_0001>
module attributes {stable_mosaic.version = 11 : i64} {
  func.func @_lora_linear_kernel(%arg0: i32, %arg1: i32, %arg2: i32, %arg3: memref<16x32xf32, #tpu.memory_space<vmem>>, %arg4: memref<32x128xf32, #tpu.memory_space<vmem>>, %arg5: memref<1x128xf32, #tpu.memory_space<vmem>>, %arg6: memref<32x8xf32, #tpu.memory_space<vmem>>, %arg7: memref<8x128xf32, #tpu.memory_space<vmem>>, %arg8: memref<16x128xf32, #tpu.memory_space<vmem>>, %arg9: memref<16x128xf32, #tpu.memory_space<vmem>>, %arg10: memref<16x8xf32, #tpu.memory_space<vmem>>) attributes {dimension_semantics = [#tpu.dimension_semantics<parallel>, #tpu.dimension_semantics<arbitrary>, #tpu.dimension_semantics<arbitrary>], iteration_bounds = array<i64: 1, 1, 1>, scalar_prefetch = 0 : i64, scratch_operands = 2 : i64, tpu.core_type = #tpu.core_type<tc>, window_params = [{transform_indices = @transform_0, window_bounds = array<i64: 16, 32>}, {transform_indices = @transform_1, window_bounds = array<i64: 32, 128>}, {transform_indices = @transform_2, window_bounds = array<i64: 1, 128>}, {transform_indices = @transform_3, window_bounds = array<i64: 32, 8>}, {transform_indices = @transform_4, window_bounds = array<i64: 8, 128>}, {transform_indices = @transform_5, window_bounds = array<i64: 16, 128>}]} {
    %c0_i32 = arith.constant 0 : i32
    %0 = arith.cmpi eq, %arg2, %c0_i32 : i32
    %1 = arith.extui %0 : i1 to i32
    %c0_i32_0 = arith.constant 0 : i32
    %2 = arith.cmpi ne, %1, %c0_i32_0 : i32
    scf.if %2 {
      %cst_15 = arith.constant 0.000000e+00 : f32
      %20 = vector.broadcast %cst_15 : f32 to vector<16x128xf32>
      %c0_16 = arith.constant 0 : index
      %c0_17 = arith.constant 0 : index
      %21 = vector.load %arg9[%c0_16, %c0_17] : memref<16x128xf32, #tpu.memory_space<vmem>>, vector<16x128xf32>
      tpu.vector_store %arg9[%c0_16, %c0_17], %20 {strides = array<i32>} : memref<16x128xf32, #tpu.memory_space<vmem>>, vector<16x128xf32>,
    } else {
    }
    %c0 = arith.constant 0 : index
    %c0_1 = arith.constant 0 : index
    %3 = vector.load %arg3[%c0, %c0_1] : memref<16x32xf32, #tpu.memory_space<vmem>>, vector<16x32xf32>
    %c0_2 = arith.constant 0 : index
    %c0_3 = arith.constant 0 : index
    %4 = vector.load %arg9[%c0_2, %c0_3] : memref<16x128xf32, #tpu.memory_space<vmem>>, vector<16x128xf32>
    %c0_4 = arith.constant 0 : index
    %c0_5 = arith.constant 0 : index
    %5 = vector.load %arg4[%c0_4, %c0_5] : memref<32x128xf32, #tpu.memory_space<vmem>>, vector<32x128xf32>
    %cst = arith.constant dense<0.000000e+00> : vector<16x128xf32>
    %6 = tpu.matmul %3, %5, %cst {dimension_numbers = #tpu.dot_dimension_numbers<[1], [0], [0], [1], [0, 0, 1, 1], [], []>} : vector<16x32xf32>, vector<32x128xf32>, vector<16x128xf32> -> vector<16x128xf32>
    %7 = arith.addf %4, %6 : vector<16x128xf32>
    %c0_6 = arith.constant 0 : index
    %c0_7 = arith.constant 0 : index
    %8 = vector.load %arg9[%c0_6, %c0_7] : memref<16x128xf32, #tpu.memory_space<vmem>>, vector<16x128xf32>
    tpu.vector_store %arg9[%c0_6, %c0_7], %7 {strides = array<i32>} : memref<16x128xf32, #tpu.memory_space<vmem>>, vector<16x128xf32>,
    %c0_i32_8 = arith.constant 0 : i32
    %9 = arith.cmpi eq, %arg1, %c0_i32_8 : i32
    %c0_i32_9 = arith.constant 0 : i32
    %10 = arith.cmpi eq, %arg2, %c0_i32_9 : i32
    %11 = arith.andi %9, %10 : i1
    %12 = arith.extui %11 : i1 to i32
    %c0_i32_10 = arith.constant 0 : i32
    %13 = arith.cmpi ne, %12, %c0_i32_10 : i32
    scf.if %13 {
      %cst_15 = arith.constant 0.000000e+00 : f32
      %20 = vector.broadcast %cst_15 : f32 to vector<16x8xf32>
      %c0_16 = arith.constant 0 : index
      %c0_17 = arith.constant 0 : index
      %21 = vector.load %arg10[%c0_16, %c0_17] : memref<16x8xf32, #tpu.memory_space<vmem>>, vector<16x8xf32>
      tpu.vector_store %arg10[%c0_16, %c0_17], %20 {strides = array<i32>} : memref<16x8xf32, #tpu.memory_space<vmem>>, vector<16x8xf32>,
    } else {
    }
    %c0_i32_11 = arith.constant 0 : i32
    %14 = arith.cmpi eq, %arg1, %c0_i32_11 : i32
    %15 = arith.extui %14 : i1 to i32
    %c0_i32_12 = arith.constant 0 : i32
    %16 = arith.cmpi ne, %15, %c0_i32_12 : i32
    scf.if %16 {
      %c0_15 = arith.constant 0 : index
      %c0_16 = arith.constant 0 : index
      %20 = vector.load %arg10[%c0_15, %c0_16] : memref<16x8xf32, #tpu.memory_space<vmem>>, vector<16x8xf32>
      %c0_17 = arith.constant 0 : index
      %c0_18 = arith.constant 0 : index
      %21 = vector.load %arg6[%c0_17, %c0_18] : memref<32x8xf32, #tpu.memory_space<vmem>>, vector<32x8xf32>
      %cst_19 = arith.constant dense<0.000000e+00> : vector<16x8xf32>
      %22 = tpu.matmul %3, %21, %cst_19 {dimension_numbers = #tpu.dot_dimension_numbers<[1], [0], [0], [1], [0, 0, 1, 1], [], []>} : vector<16x32xf32>, vector<32x8xf32>, vector<16x8xf32> -> vector<16x8xf32>
      %23 = arith.addf %20, %22 : vector<16x8xf32>
      %c0_20 = arith.constant 0 : index
      %c0_21 = arith.constant 0 : index
      %24 = vector.load %arg10[%c0_20, %c0_21] : memref<16x8xf32, #tpu.memory_space<vmem>>, vector<16x8xf32>
      tpu.vector_store %arg10[%c0_20, %c0_21], %23 {strides = array<i32>} : memref<16x8xf32, #tpu.memory_space<vmem>>, vector<16x8xf32>,
    } else {
    }
    %c0_i32_13 = arith.constant 0 : i32
    %17 = arith.cmpi eq, %arg2, %c0_i32_13 : i32
    %18 = arith.extui %17 : i1 to i32
    %c0_i32_14 = arith.constant 0 : i32
    %19 = arith.cmpi ne, %18, %c0_i32_14 : i32
    scf.if %19 {
      %c0_15 = arith.constant 0 : index
      %c0_16 = arith.constant 0 : index
      %20 = vector.load %arg10[%c0_15, %c0_16] : memref<16x8xf32, #tpu.memory_space<vmem>>, vector<16x8xf32>
      %c0_17 = arith.constant 0 : index
      %c0_18 = arith.constant 0 : index
      %21 = vector.load %arg7[%c0_17, %c0_18] : memref<8x128xf32, #tpu.memory_space<vmem>>, vector<8x128xf32>
      %cst_19 = arith.constant dense<0.000000e+00> : vector<16x128xf32>
      %22 = tpu.matmul %20, %21, %cst_19 {dimension_numbers = #tpu.dot_dimension_numbers<[1], [0], [0], [1], [0, 0, 1, 1], [], []>} : vector<16x8xf32>, vector<8x128xf32>, vector<16x128xf32> -> vector<16x128xf32>
      %c0_20 = arith.constant 0 : index
      %c0_21 = arith.constant 0 : index
      %23 = vector.load %arg9[%c0_20, %c0_21] : memref<16x128xf32, #tpu.memory_space<vmem>>, vector<16x128xf32>
      %24 = arith.addf %23, %22 : vector<16x128xf32>
      %c0_22 = arith.constant 0 : index
      %c0_23 = arith.constant 0 : index
      %25 = vector.load %arg5[%c0_22, %c0_23] : memref<1x128xf32, #tpu.memory_space<vmem>>, vector<1x128xf32>
      %26 = vector.broadcast %25 : vector<1x128xf32> to vector<16x128xf32>
      %27 = arith.addf %24, %26 : vector<16x128xf32>
      %c0_24 = arith.constant 0 : index
      %c0_25 = arith.constant 0 : index
      %28 = vector.load %arg8[%c0_24, %c0_25] : memref<16x128xf32, #tpu.memory_space<vmem>>, vector<16x128xf32>
      tpu.vector_store %arg8[%c0_24, %c0_25], %27 {strides = array<i32>} : memref<16x128xf32, #tpu.memory_space<vmem>>, vector<16x128xf32>,
    } else {
    }
    return
  }
  func.func @transform_0(%arg0: i32, %arg1: i32, %arg2: i32) -> (i32, i32) {
    %c0_i32 = arith.constant 0 : i32
    return %arg0, %arg2 : i32, i32
  }
  func.func @transform_1(%arg0: i32, %arg1: i32, %arg2: i32) -> (i32, i32) {
    %c0_i32 = arith.constant 0 : i32
    return %arg2, %arg1 : i32, i32
  }
  func.func @transform_2(%arg0: i32, %arg1: i32, %arg2: i32) -> (i32, i32) {
    %c0_i32 = arith.constant 0 : i32
    %c0_i32_0 = arith.constant 0 : i32
    return %c0_i32, %arg1 : i32, i32
  }
  func.func @transform_3(%arg0: i32, %arg1: i32, %arg2: i32) -> (i32, i32) {
    %c0_i32 = arith.constant 0 : i32
    %c0_i32_0 = arith.constant 0 : i32
    return %arg2, %c0_i32 : i32, i32
  }
  func.func @transform_4(%arg0: i32, %arg1: i32, %arg2: i32) -> (i32, i32) {
    %c0_i32 = arith.constant 0 : i32
    %c0_i32_0 = arith.constant 0 : i32
    return %c0_i32, %arg1 : i32, i32
  }
  func.func @transform_5(%arg0: i32, %arg1: i32, %arg2: i32) -> (i32, i32) {
    %c0_i32 = arith.constant 0 : i32
    return %arg0, %arg1 : i32, i32
  }
}

</mosaic_0001>

<bundles_post_ra>
// kernel: tpu_custom_call.1
= control target key start
LH: loop header
LB: loop body
LE: loop exit
PB: predicated region body
PF: predicated region fallthrough
CT: control target
= control target key end

     0   :  { %10 = vsyncpa [#allocation5], 0  ;;  %s577_s0 = inlined_call_operand.hbm [shape: f32[16,32], index: 0, kind: input, shape index: {}]   ;;  %s578_s1 = inlined_call_operand.vmem [shape: f32[32,128], index: 1, kind: input, shape index: {}]   ;;  %s579_s2 = inlined_call_operand.vmem [shape: f32[1,128], index: 2, kind: input, shape index: {}]   ;;  %s580_s3 = inlined_call_operand.vmem [shape: f32[32,8], index: 3, kind: input, shape index: {}]   ;;  %s581_s4 = inlined_call_operand.vmem [shape: f32[8,128], index: 4, kind: input, shape index: {}]   ;;  %s582_s5 = inlined_call_operand.hbm [shape: f32[16,128], index: 5, kind: output, shape index: {}]  }
   0x1   :  { %11 = vsyncpa [#allocation6], 0  ;;  %s472_s18 = smov [#allocation4]   ;;  %s424_s22 = scalar_lea.hbm %s577_s0, 256 }
   0x2   :  { %s17_s19 = sshll.u32 %s472_s18, 4  ;;  %p425_p0 = scmp.ne.s32.totalorder %s577_s0, %s424_s22  ;;  %s18_s19 = int_to_ptr.vmem [resolvable:$true] %s17_s19 }
   0x3   :  { %p428_p1 = scmp.lt.u32.totalorder %s424_s22, %s577_s0 }
   0x5   :  { %p430_p2 = pnand %p428_p1, %p425_p0 }
   0x7   :  { %433 = shalt.err (!%p430_p2)
}
   0x8   :  { %s434_s27 = scalar_lea.vmem %s18_s19, 256  ;;  %p439_p4 = scmp.lt.s32.totalorder %s18_s19, %s18_s19 }
   0x9   :  { %p435_p3 = scmp.ne.s32.totalorder %s18_s19, %s434_s27  ;;  %p440_p5 = scmp.lt.s32.totalorder %s434_s27, %s434_s27 }
   0xb   :  { %p441_p6 = por %p440_p5, %p439_p4 }
   0xd   :  { %p442_p7 = pnand %p441_p6, %p435_p3 }
   0xf   :  { %445 = shalt.err (!%p442_p7)
}
  0x10   :  { %s473_s28 = smov 128   ;;  %s474_s29 = smov 8  }
  0x11   :  { %23 = dma.hbm_to_vmem [thread:$0]  %s577_s0, 256, %s18_s19, [#allocation5], %s473_s28, %s473_s28, %s474_s29  }
  0x12   :  { %468 = dma.done.wait [#allocation5], 256  }
  0x13   :  { %469 = vsyncadd [#allocation5], 4294967040  ;;  %vm140_vm0 = vcmask 64512   ;;  %v475_v0 = vmov 0.0   ;;  %vm49_vm1 = vcmask 261120   ;;  %v148_v1 = vld [vmem:[%s580_s3] sm:$0xff] }
  0x14   :  { %142 = vst.msk [vmem:[#allocation3 + $0x8] sm:$0xff] %vm140_vm0, %v475_v0  ;;  %141 = vst.msk [vmem:[#allocation3] sm:$0xff] %vm140_vm0, %v475_v0  ;;  %v149_v2 = vld [vmem:[%s580_s3 + $0x8] sm:$0xff]  ;;  %v150_v3 = vld [vmem:[%s580_s3 + $0x10] sm:$0xff]  ;;  %s476_s23 = smov [#allocation7]  }
  0x15   :  { %v409_v4 = vpack.c.bf16 %v149_v2, %v148_v1  ;;  %v151_v5 = vld [vmem:[%s580_s3 + $0x18] sm:$0xff]  ;;  %v41_v6 = vld [vmem:[#allocation4] sm:$0xff]  ;;  %v45_v8 = vld [vmem:[%s578_s1] sm:$0xff]  ;;  %s340_s24 = sshll.u32 %s476_s23, 4  ;;  %s341_s24 = int_to_ptr.vmem [resolvable:$true] %s340_s24 }
  0x16   :  { %v413_v7 = vpack.c.bf16 %v151_v5, %v150_v3  ;;  %393 = vmatprep.mubr.msk.f32.mxu1 %vm49_vm1, %v41_v6  ;;  %v46_v9 = vld [vmem:[%s578_s1 + $0x8] sm:$0xff]  ;;  %v47_v10 = vld [vmem:[%s578_s1 + $0x10] sm:$0xff]  ;;  %382 = vmatprep.mubr.msk.f32.mxu0 %vm49_vm1, %v41_v6  ;;  %v48_v12 = vld [vmem:[%s578_s1 + $0x18] sm:$0xff]  ;;  %s446_s25 = scalar_lea.vmem %s341_s24, 256  ;;  %p451_p9 = scmp.lt.s32.totalorder %s341_s24, %s341_s24 }
  0x17   :  { %410 = vmatprep.subr.bf16.mxu1 %v409_v4  ;;  %v401_v11 = vpack.c.bf16 %v46_v9, %v45_v8  ;;  %v405_v13 = vpack.c.bf16 %v48_v12, %v47_v10  ;;  %v42_v14 = vld [vmem:[#allocation4 + $0x8] sm:$0xff]  ;;  %v237_v15 = vld [vmem:[%s581_s4] sm:$0xff]  ;;  %p447_p8 = scmp.ne.s32.totalorder %s341_s24, %s446_s25  ;;  %p452_p10 = scmp.lt.s32.totalorder %s446_s25, %s446_s25 }
  0x18   :  { %412 = vmatpush3.bf16.msra.mxu1 %v409_v4  ;;  %v358_v24 = vld [vmem:[%s579_s2] ss:$0 sm:$0xff] }
  0x19   :  { %414 = vmatprep.subr.bf16.mxu1 %v413_v7  ;;  %402 = vmatprep.subr.bf16.mxu0 %v401_v11  ;;  %p453_p11 = por %p452_p10, %p451_p9 }
  0x1a   :  { %404 = vmatpush3.bf16.msra.mxu0 %v401_v11 }
  0x1b   :  { %406 = vmatprep.subr.bf16.mxu0 %v405_v13  ;;  %v147_v16 = vld [vmem:[#allocation3 + $0x8] sm:$0xff]  ;;  %v146_v17 = vld [vmem:[#allocation3] sm:$0xff]  ;;  %p454_p12 = pnand %p453_p11, %p447_p8 }
  0x1c   :  { %416 = vmatpush3.bf16.msra.mxu1 %v413_v7 }
  0x1e   :  { %408 = vmatpush3.bf16.msra.mxu0 %v405_v13 }
  0x1f   :  { %394 = vmatmul.mubr.msk.f32.vlgmr.msra.gmra.mrb[0].mxu1 %vm49_vm1, %v42_v14  ;;  %396 = vmatprep.subr.mxu0 %v237_v15 }
  0x21   :  { %383 = vmatmul.mubr.msk.f32.vlgmr.msra.gmra.mrb[0].mxu0 %vm49_vm1, %v42_v14 }
  0x22   :  { %397 = vmatpush3.msra.mxu0 %v237_v15 }
  0xf2   :  { %v395_v18 = vpop.f32.mrb[0].mxu1 }
  0xf3   :  { %v228_v19 = vadd.f32 %v395_v18, %v147_v16  ;;  %v218_v20 = vpop.f32.mrb[1].mxu1 }
  0xf4   :  { %v227_v21 = vadd.f32 %v218_v20, %v146_v17 }
  0xf5   :  { %231 = vst.msk [vmem:[#allocation3 + $0x8] sm:$0xff] %vm140_vm0, %v228_v19 }
  0xf6   :  { %230 = vst.msk [vmem:[#allocation3] sm:$0xff] %vm140_vm0, %v227_v21 }
  0xfc   :  { %v236_v23 = vld [vmem:[#allocation3 + $0x8] sm:$0xff] }
  0xfd   :  { %v235_v22 = vld [vmem:[#allocation3] sm:$0xff] }
  0xfe   :  { %398 = vmatprep.mubr.msk.f32.mxu0 %vm140_vm0, %v235_v22 }
  0xff   :  { %399 = vmatmul.mubr.msk.f32.vlgmr.msra.gmra.mrb[0].mxu0 %vm140_vm0, %v236_v23 }
 0x1d2   :  { %v400_v25 = vpop.f32.mrb[0].mxu0 }
 0x1d3   :  { %v332_v26 = vadd.f32 %v400_v25, %v358_v24  ;;  %v311_v27 = vpop.f32.mrb[1].mxu0 }
 0x1d4   :  { %v331_v28 = vadd.f32 %v358_v24, %v311_v27 }
 0x1d5   :  { %334 = vst [vmem:[#allocation7 + $0x8] sm:$0xff] %v332_v26 }
 0x1d6   :  { %333 = vst [vmem:[#allocation7] sm:$0xff] %v331_v28 }
 0x1d7   :  { %457 = shalt.err (!%p454_p12)
}
 0x1d8   :  { %s458_s2 = scalar_lea.hbm %s582_s5, 256 }
 0x1d9   :  { %p459_p13 = scmp.ne.s32.totalorder %s582_s5, %s458_s2  ;;  %p462_p0 = scmp.lt.u32.totalorder %s458_s2, %s582_s5 }
 0x1db   :  { %p464_p1 = pnand %p462_p0, %p459_p13 }
 0x1dd   :  { %467 = shalt.err (!%p464_p1)
}
 0x1de   :  { %346 = dma.vmem_to_hbm [thread:$0]  %s341_s24, 256, %s582_s5, [#allocation6], %s473_s28, %s473_s28, %s474_s29  }
 0x1df   :  { %470 = dma.done.wait [#allocation6], 256  }
 0x1e0   :  { %471 = vsyncadd [#allocation6], 4294967040 }
 0x1e1   :  { %350 = vsyncpa [#allocation5], 1 }
 0x1e2   :  { %351 = vsyncpa [#allocation6], 1 }

</bundles_post_ra>
